<compile_context>
chip_gen: v5e
topology: v5e:2x2
jax: 0.10.0
libtpu: 0.0.40
codegen_flags: <defaults>
</compile_context>

<pallas_src>
import functools

import jax
import jax.numpy as jnp
from jax.experimental import pallas as pl
from jax.experimental.pallas import tpu as pltpu


# ---------------------------------------------------------------------------
# Helpers
# ---------------------------------------------------------------------------

def _round_up(x, m):
    return ((x + m - 1) // m) * m


def _cdiv(a, b):
    return -(-a // b)


def _static_pow(base, exponent):
    """base ** exponent for positive `base` and a *static* float exponent."""
    e = float(exponent)
    if e == 0.0:
        return jnp.ones_like(base)
    if e == 1.0:
        return base
    if e == 2.0:
        return base * base
    if e == 3.0:
        return base * base * base
    return jnp.exp(e * jnp.log(base))  # base > 0 by construction (eps added)


def _per_logit_terms(x, alpha, gamma, eps):
    """Per-logit focal terms.  Returns (d, b) with d = a - b so that
    L[i, j] = t_i * d_j + b_j."""
    p = jax.nn.sigmoid(x)
    a = (-alpha) * _static_pow(1.0 - p + eps, gamma) * jnp.log(p + eps)
    b = (-(1.0 - alpha)) * _static_pow(p + eps, gamma) * jnp.log(1.0 - p + eps)
    return a - b, b


def _pad_1d_to_row(vec, width):
    n = vec.shape[0]
    if width == n:
        return vec.reshape(1, n)
    return jnp.zeros((1, width), vec.dtype).at[0, :n].set(vec)


def _pad_1d_to_col(vec, height):
    n = vec.shape[0]
    if height == n:
        return vec.reshape(n, 1)
    return jnp.zeros((height, 1), vec.dtype).at[:n, 0].set(vec)


# ---------------------------------------------------------------------------
# Pallas kernels
# ---------------------------------------------------------------------------

def _column_terms_kernel(alpha, gamma, eps, x_ref, d_ref, b_ref):
    """O(N) prep: per-column focal terms, computed once per column (hoisted out
    of the row loop of the broadcast kernel)."""
    d, b = _per_logit_terms(x_ref[...], alpha, gamma, eps)      # (1, tn) each
    d_ref[...] = d
    b_ref[...] = b


def _broadcast_kernel(d_ref, b_ref, t_ref, o_ref):
    """One (tm, tn) tile of the cross-batch matrix: L = t*d + b.

    d_ref, b_ref: (1, tn)   per-column terms
    t_ref:        (tm, 1)   per-row targets
    o_ref:        (tm, tn)  output tile (lane-dense, partial edges masked)
    """
    o_ref[...] = (t_ref[...] * d_ref[...] + b_ref[...]).astype(o_ref.dtype)


def _fused_reduce_kernel(alpha, gamma, eps, n_valid, scale,
                         x_ref, t_ref, o_ref, acc_t, acc_d, acc_b):
    """Fused 'mean'/'sum' reduction: O(N) work, no N^2 matrix materialized.

    Uses sum_ij(t_i*d_j + b_j) = (sum_i t_i)*(sum_j d_j) + N*(sum_j b_j).
    Padded lanes are masked via a column iota against n_valid.
    """
    j = pl.program_id(0)

    @pl.when(j == 0)
    def _init():
        acc_t[...] = jnp.zeros_like(acc_t)
        acc_d[...] = jnp.zeros_like(acc_d)
        acc_b[...] = jnp.zeros_like(acc_b)

    x = x_ref[...]                                   # (1, tc) logits
    t = t_ref[...]                                   # (1, tc) targets
    tc = x.shape[1]
    col = j * tc + jax.lax.broadcasted_iota(jnp.int32, x.shape, 1)
    mask = (col < n_valid).astype(jnp.float32)

    d, b = _per_logit_terms(x, alpha, gamma, eps)
    acc_t[...] += jnp.sum(t * mask, axis=1, keepdims=True)
    acc_d[...] += jnp.sum(d * mask, axis=1, keepdims=True)
    acc_b[...] += jnp.sum(b * mask, axis=1, keepdims=True)

    @pl.when(j == pl.num_programs(0) - 1)
    def _finalize():
        total = acc_t[...] * acc_d[...] + float(n_valid) * acc_b[...]
        o_ref[...] = total * scale


# ---------------------------------------------------------------------------
# Wrappers
# ---------------------------------------------------------------------------

def _cross_focal_matrix(logits, targets, alpha, gamma, eps,
                        tile_m, tile_n, out_dtype):
    """reduction='none' path: (n, n) cross-batch focal matrix."""
    n = logits.shape[0]

    tm = min(int(tile_m), _round_up(n, 8))
    tn = min(int(tile_n), _round_up(n, 128))
    # v7x has 2 TensorCores: keep >= 2 "parallel" grid steps for mid-size N so
    # the grid doesn't collapse onto one core (extra step is ~0.35 us elsewhere).
    if n > 8 and _cdiv(n, tm) * _cdiv(n, tn) == 1:
        tm = _round_up(_cdiv(n, 2), 8)

    grid_m, grid_n = _cdiv(n, tm), _cdiv(n, tn)
    m_pad, n_pad = grid_m * tm, grid_n * tn

    # Zero-pad inputs to full tile multiples so edge-tile math stays finite
    # (output edge blocks are clipped on store, so padded lanes never escape).
    x_row = _pad_1d_to_row(logits, n_pad)        # (1, n_pad)
    t_col = _pad_1d_to_col(targets, m_pad)       # (m_pad, 1)

    # Kernel 1: per-column terms, computed exactly once per column (O(N)).
    d_row, b_row = pl.pallas_call(
        functools.partial(_column_terms_kernel, alpha, gamma, eps),
        out_shape=(jax.ShapeDtypeStruct((1, n_pad), jnp.float32),
                   jax.ShapeDtypeStruct((1, n_pad), jnp.float32)),
        grid=(grid_n,),
        in_specs=[pl.BlockSpec((1, tn), lambda j: (0, j))],
        out_specs=(pl.BlockSpec((1, tn), lambda j: (0, j)),
                   pl.BlockSpec((1, tn), lambda j: (0, j))),
        compiler_params=pltpu.CompilerParams(
            dimension_semantics=("parallel",)),
    )(x_row)

    # Kernel 2: the O(N^2) broadcast, written directly at shape (n, n)
    # (no post-kernel [:n, :n] slice copy; partial edge blocks are masked).
    loss_mat = pl.pallas_call(
        _broadcast_kernel,
        out_shape=jax.ShapeDtypeStruct((n, n), out_dtype),
        grid=(grid_m, grid_n),
        in_specs=[pl.BlockSpec((1, tn), lambda i, j: (0, j)),   # d (columns)
                  pl.BlockSpec((1, tn), lambda i, j: (0, j)),   # b (columns)
                  pl.BlockSpec((tm, 1), lambda i, j: (i, 0))],  # t (rows)
        out_specs=pl.BlockSpec((tm, tn), lambda i, j: (i, j)),
        compiler_params=pltpu.CompilerParams(
            dimension_semantics=("parallel", "parallel")),
    )(d_row, b_row, t_col)

    # Mirror `loss_tmp.squeeze(dim=1)` behaviour of the reference.
    if n == 1:
        return loss_mat.reshape(1, 1, 1)
    return loss_mat.reshape(n, n, 1, 1)


def _fused_reduction(logits, targets, alpha, gamma, eps, reduction, tile_c):
    """reduction='mean'/'sum' path: O(N) fused kernel, no matrix in HBM."""
    n = logits.shape[0]
    tc = min(int(tile_c), _round_up(n, 128))
    grid_c = _cdiv(n, tc)
    n_pad = grid_c * tc

    x_row = _pad_1d_to_row(logits, n_pad)        # (1, n_pad)
    t_row = _pad_1d_to_row(targets, n_pad)       # (1, n_pad)

    # mean divides by the element count of loss_tmp (n*n for n>1, 1 for n==1;
    # n*n covers both since 1*1 == 1).
    scale = 1.0 if reduction == "sum" else 1.0 / float(n * n)

    total = pl.pallas_call(
        functools.partial(_fused_reduce_kernel, alpha, gamma, eps, n, scale),
        out_shape=jax.ShapeDtypeStruct((1, 1), jnp.float32),
        grid=(grid_c,),
        in_specs=[pl.BlockSpec((1, tc), lambda j: (0, j)),
                  pl.BlockSpec((1, tc), lambda j: (0, j))],
        out_specs=pl.BlockSpec((1, 1), lambda j: (0, 0)),
        scratch_shapes=[pltpu.VMEM((1, 1), jnp.float32),
                        pltpu.VMEM((1, 1), jnp.float32),
                        pltpu.VMEM((1, 1), jnp.float32)],
        compiler_params=pltpu.CompilerParams(
            dimension_semantics=("arbitrary",)),
    )(x_row, t_row)
    return total[0, 0]


def binary_focal_loss_with_logits(logits, targets, alpha=0.25, gamma=2.0,
                                  reduction="none", eps=1e-8,
                                  tile_m=1024, tile_n=2048,
                                  out_dtype=jnp.float32):
    """JAX/Pallas equivalent of the PyTorch binary_focal_loss_with_logits for
    1-D `(N,)` logits / targets (the usage in train0_fl.py).

    reduction='none' returns (N, N, 1, 1) ((1, 1, 1) when N == 1), exactly
    matching the reference's broadcasting + squeeze(dim=1).  'mean'/'sum' are
    fused in-kernel and never materialize the N^2 matrix.
    `out_dtype` (e.g. jnp.bfloat16) is an opt-in for reduction='none' that
    halves the N^2 store bytes at the cost of numerics vs the f32 reference.
    """
    # TODO(synk): inputs with extra trailing spatial dims ((N, 1, H, W), ...)
    # are not handled; only the 1-D per-sample-logit case of the training script.
    logits = jnp.asarray(logits, jnp.float32).reshape(-1)
    targets = jnp.asarray(targets, jnp.float32).reshape(-1)
    if logits.shape[0] != targets.shape[0]:
        raise ValueError(
            "Expected input batch_size ({}) to match target batch_size ({})."
            .format(logits.shape[0], targets.shape[0]))

    alpha, gamma, eps = float(alpha), float(gamma), float(eps)

    if reduction == "none":
        return _cross_focal_matrix(logits, targets, alpha, gamma, eps,
                                   tile_m, tile_n, out_dtype)
    elif reduction in ("mean", "sum"):
        return _fused_reduction(logits, targets, alpha, gamma, eps,
                                reduction, tile_n)
    else:
        raise NotImplementedError("Invalid reduction mode: {}".format(reduction))


class BinaryFocalLossWithLogits:
    """Module-style wrapper matching the PyTorch class interface."""

    def __init__(self, alpha=0.25, gamma=2.0, reduction="none"):
        self.alpha = float(alpha)
        self.gamma = float(gamma)
        self.reduction = reduction
        self.eps = 1e-8

    def __call__(self, input, target):
        return binary_focal_loss_with_logits(
            input, target, self.alpha, self.gamma, self.reduction, self.eps)


# ---------------------------------------------------------------------------
# Pure-JAX reference (mirrors the PyTorch broadcasting exactly)
# ---------------------------------------------------------------------------

def _reference(logits, targets, alpha, gamma, eps):
    p = jax.nn.sigmoid(logits.astype(jnp.float32))              # (N,)
    a = -alpha * (1.0 - p + eps) ** gamma * jnp.log(p + eps)
    b = -(1.0 - alpha) * (p + eps) ** gamma * jnp.log(1.0 - p + eps)
    t = targets.astype(jnp.float32)
    l = t[:, None] * a[None, :] + (1.0 - t[:, None]) * b[None, :]
    n = logits.shape[0]
    return l.reshape(n, n, 1, 1)


if __name__ == "__main__":
    key = jax.random.PRNGKey(0)
    kx, kt, kx2, kt2 = jax.random.split(key, 4)

    # Case 1: tile-friendly N, reduction='none'.
    N = 256
    logits = 2.0 * jax.random.normal(kx, (N,), jnp.float32)
    targets = (jax.random.uniform(kt, (N,)) > 0.5).astype(jnp.float32)

    none_fn = jax.jit(functools.partial(
        binary_focal_loss_with_logits, alpha=0.25, gamma=2.0, reduction="none"))
    loss = jax.block_until_ready(none_fn(logits, targets))
    ref = _reference(logits, targets, 0.25, 2.0, 1e-8)
    assert loss.shape == (N, N, 1, 1), loss.shape
    assert bool(jnp.all(jnp.isfinite(loss)))
    assert bool(jnp.allclose(loss, ref, rtol=1e-4, atol=1e-5)), "none: mismatch"

    # Case 2: non-tile-aligned N -> exercises masked partial edge output blocks
    # (output is written at its final (M, M) shape, no slice copy).
    M = 180
    logits2 = 3.0 * jax.random.normal(kx2, (M,), jnp.float32)
    targets2 = (jax.random.uniform(kt2, (M,)) > 0.5).astype(jnp.float32)
    loss2 = jax.block_until_ready(none_fn(logits2, targets2))
    ref2 = _reference(logits2, targets2, 0.25, 2.0, 1e-8)
    assert loss2.shape == (M, M, 1, 1), loss2.shape
    assert bool(jnp.allclose(loss2, ref2, rtol=1e-4, atol=1e-5)), "edge: mismatch"

    # Case 3: fused 'mean' / 'sum' reductions (no N^2 matrix materialized).
    mean_fn = jax.jit(functools.partial(
        binary_focal_loss_with_logits, alpha=0.25, gamma=2.0, reduction="mean"))
    sum_fn = jax.jit(functools.partial(
        binary_focal_loss_with_logits, alpha=0.25, gamma=2.0, reduction="sum"))
    mean_loss = jax.block_until_ready(mean_fn(logits2, targets2))
    sum_loss = jax.block_until_ready(sum_fn(logits, targets))
    assert bool(jnp.allclose(mean_loss, jnp.mean(ref2), rtol=1e-4, atol=1e-5)), "mean"
    assert bool(jnp.allclose(sum_loss, jnp.sum(ref), rtol=1e-4, atol=1e-3)), "sum"

    print("KERNEL_OK")
</pallas_src>

<mosaic_0001>
module attributes {stable_mosaic.version = 11 : i64} {
  func.func @_broadcast_kernel(%arg0: i32, %arg1: i32, %arg2: memref<1x256xf32, #tpu.memory_space<vmem>>, %arg3: memref<1x256xf32, #tpu.memory_space<vmem>>, %arg4: memref<128x1xf32, #tpu.memory_space<vmem>>, %arg5: memref<128x256xf32, #tpu.memory_space<vmem>>) attributes {dimension_semantics = [#tpu.dimension_semantics<parallel>, #tpu.dimension_semantics<parallel>], iteration_bounds = array<i64: 2, 1>, scalar_prefetch = 0 : i64, scratch_operands = 0 : i64, tpu.core_type = #tpu.core_type<tc>, window_params = [{transform_indices = @transform_0, window_bounds = array<i64: 1, 256>}, {transform_indices = @transform_1, window_bounds = array<i64: 1, 256>}, {transform_indices = @transform_2, window_bounds = array<i64: 128, 1>}, {transform_indices = @transform_3, window_bounds = array<i64: 128, 256>}]} {
    %c0 = arith.constant 0 : index
    %c0_0 = arith.constant 0 : index
    %0 = vector.load %arg4[%c0, %c0_0] : memref<128x1xf32, #tpu.memory_space<vmem>>, vector<128x1xf32>
    %c0_1 = arith.constant 0 : index
    %c0_2 = arith.constant 0 : index
    %1 = vector.load %arg2[%c0_1, %c0_2] : memref<1x256xf32, #tpu.memory_space<vmem>>, vector<1x256xf32>
    %2 = vector.broadcast %0 : vector<128x1xf32> to vector<128x256xf32>
    %3 = vector.broadcast %1 : vector<1x256xf32> to vector<128x256xf32>
    %4 = arith.mulf %2, %3 : vector<128x256xf32>
    %c0_3 = arith.constant 0 : index
    %c0_4 = arith.constant 0 : index
    %5 = vector.load %arg3[%c0_3, %c0_4] : memref<1x256xf32, #tpu.memory_space<vmem>>, vector<1x256xf32>
    %6 = vector.broadcast %5 : vector<1x256xf32> to vector<128x256xf32>
    %7 = arith.addf %4, %6 : vector<128x256xf32>
    %c0_5 = arith.constant 0 : index
    %c0_6 = arith.constant 0 : index
    %8 = vector.load %arg5[%c0_5, %c0_6] : memref<128x256xf32, #tpu.memory_space<vmem>>, vector<128x256xf32>
    tpu.vector_store %arg5[%c0_5, %c0_6], %7 {strides = array<i32>} : memref<128x256xf32, #tpu.memory_space<vmem>>, vector<128x256xf32>,
    return
  }
  func.func @transform_0(%arg0: i32, %arg1: i32) -> (i32, i32) {
    %c0_i32 = arith.constant 0 : i32
    %c0_i32_0 = arith.constant 0 : i32
    return %c0_i32, %arg1 : i32, i32
  }
  func.func @transform_1(%arg0: i32, %arg1: i32) -> (i32, i32) {
    %c0_i32 = arith.constant 0 : i32
    %c0_i32_0 = arith.constant 0 : i32
    return %c0_i32, %arg1 : i32, i32
  }
  func.func @transform_2(%arg0: i32, %arg1: i32) -> (i32, i32) {
    %c0_i32 = arith.constant 0 : i32
    %c0_i32_0 = arith.constant 0 : i32
    return %arg0, %c0_i32 : i32, i32
  }
  func.func @transform_3(%arg0: i32, %arg1: i32) -> (i32, i32) {
    %c0_i32 = arith.constant 0 : i32
    return %arg0, %arg1 : i32, i32
  }
}

module attributes {stable_mosaic.version = 11 : i64} {
  func.func @_column_terms_kernel(%arg0: i32, %arg1: memref<1x256xf32, #tpu.memory_space<vmem>>, %arg2: memref<1x256xf32, #tpu.memory_space<vmem>>, %arg3: memref<1x256xf32, #tpu.memory_space<vmem>>) attributes {dimension_semantics = [#tpu.dimension_semantics<parallel>], iteration_bounds = array<i64: 1>, scalar_prefetch = 0 : i64, scratch_operands = 0 : i64, tpu.core_type = #tpu.core_type<tc>, window_params = [{transform_indices = @transform_0, window_bounds = array<i64: 1, 256>}, {transform_indices = @transform_1, window_bounds = array<i64: 1, 256>}, {transform_indices = @transform_2, window_bounds = array<i64: 1, 256>}]} {
    %c0 = arith.constant 0 : index
    %c0_0 = arith.constant 0 : index
    %0 = vector.load %arg1[%c0, %c0_0] : memref<1x256xf32, #tpu.memory_space<vmem>>, vector<1x256xf32>
    %1 = arith.negf %0 : vector<1x256xf32>
    %2 = math.exp %1 : vector<1x256xf32>
    %cst = arith.constant 1.000000e+00 : f32
    %3 = vector.broadcast %cst : f32 to vector<1x256xf32>
    %4 = arith.addf %3, %2 : vector<1x256xf32>
    %5 = arith.divf %3, %4 : vector<1x256xf32>
    %cst_1 = arith.constant 1.000000e+00 : f32
    %6 = vector.broadcast %cst_1 : f32 to vector<1x256xf32>
    %7 = arith.subf %6, %5 : vector<1x256xf32>
    %cst_2 = arith.constant 9.99999993E-9 : f32
    %8 = vector.broadcast %cst_2 : f32 to vector<1x256xf32>
    %9 = arith.addf %7, %8 : vector<1x256xf32>
    %10 = arith.mulf %9, %9 : vector<1x256xf32>
    %cst_3 = arith.constant -2.500000e-01 : f32
    %11 = vector.broadcast %cst_3 : f32 to vector<1x256xf32>
    %12 = arith.mulf %11, %10 : vector<1x256xf32>
    %cst_4 = arith.constant 9.99999993E-9 : f32
    %13 = vector.broadcast %cst_4 : f32 to vector<1x256xf32>
    %14 = arith.addf %5, %13 : vector<1x256xf32>
    %15 = math.log %14 : vector<1x256xf32>
    %16 = arith.mulf %12, %15 : vector<1x256xf32>
    %cst_5 = arith.constant 9.99999993E-9 : f32
    %17 = vector.broadcast %cst_5 : f32 to vector<1x256xf32>
    %18 = arith.addf %5, %17 : vector<1x256xf32>
    %19 = arith.mulf %18, %18 : vector<1x256xf32>
    %cst_6 = arith.constant -7.500000e-01 : f32
    %20 = vector.broadcast %cst_6 : f32 to vector<1x256xf32>
    %21 = arith.mulf %20, %19 : vector<1x256xf32>
    %cst_7 = arith.constant 1.000000e+00 : f32
    %22 = vector.broadcast %cst_7 : f32 to vector<1x256xf32>
    %23 = arith.subf %22, %5 : vector<1x256xf32>
    %cst_8 = arith.constant 9.99999993E-9 : f32
    %24 = vector.broadcast %cst_8 : f32 to vector<1x256xf32>
    %25 = arith.addf %23, %24 : vector<1x256xf32>
    %26 = math.log %25 : vector<1x256xf32>
    %27 = arith.mulf %21, %26 : vector<1x256xf32>
    %28 = arith.subf %16, %27 : vector<1x256xf32>
    %c0_9 = arith.constant 0 : index
    %c0_10 = arith.constant 0 : index
    %29 = vector.load %arg2[%c0_9, %c0_10] : memref<1x256xf32, #tpu.memory_space<vmem>>, vector<1x256xf32>
    tpu.vector_store %arg2[%c0_9, %c0_10], %28 {strides = array<i32>} : memref<1x256xf32, #tpu.memory_space<vmem>>, vector<1x256xf32>,
    %c0_11 = arith.constant 0 : index
    %c0_12 = arith.constant 0 : index
    %30 = vector.load %arg3[%c0_11, %c0_12] : memref<1x256xf32, #tpu.memory_space<vmem>>, vector<1x256xf32>
    tpu.vector_store %arg3[%c0_11, %c0_12], %27 {strides = array<i32>} : memref<1x256xf32, #tpu.memory_space<vmem>>, vector<1x256xf32>,
    return
  }
  func.func @transform_0(%arg0: i32) -> (i32, i32) {
    %c0_i32 = arith.constant 0 : i32
    %c0_i32_0 = arith.constant 0 : i32
    return %c0_i32, %arg0 : i32, i32
  }
  func.func @transform_1(%arg0: i32) -> (i32, i32) {
    %c0_i32 = arith.constant 0 : i32
    %c0_i32_0 = arith.constant 0 : i32
    return %c0_i32, %arg0 : i32, i32
  }
  func.func @transform_2(%arg0: i32) -> (i32, i32) {
    %c0_i32 = arith.constant 0 : i32
    %c0_i32_0 = arith.constant 0 : i32
    return %c0_i32, %arg0 : i32, i32
  }
}

</mosaic_0001>

<bundles_post_ra>
// kernel: binary_focal_loss_with_logits.2
= control target key start
LH: loop header
LB: loop body
LE: loop exit
PB: predicated region body
PF: predicated region fallthrough
CT: control target
= control target key end

     0   :  { %8 = vsyncpa [#allocation3], 0  ;;  %s109_s12 = smov [#allocation2]   ;;  %s134_s0 = inlined_call_operand.hbm [shape: f32[1,256], index: 0, kind: input, shape index: {}]   ;;  %s135_s1 = inlined_call_operand.vmem [shape: f32[1,256], index: 1, kind: output, shape index: {0}]   ;;  %s136_s2 = inlined_call_operand.vmem [shape: f32[1,256], index: 2, kind: output, shape index: {1}]  }
   0x1   :  { %s14_s11 = sshll.u32 %s134_s0, 4  ;;  %s16_s13 = sshll.u32 %s109_s12, 4  ;;  %s15_s11 = int_to_ptr.hbm [resolvable:$true] %s14_s11  ;;  %s17_s13 = int_to_ptr.vmem [resolvable:$true] %s16_s13 }
   0x2   :  { %19 = dma.hbm_to_vmem [thread:$0]  %s15_s11, 32, %s17_s13, [#allocation3]  }
   0x3   :  { %107 = dma.done.wait [#allocation3], 32  }
   0x4   :  { %108 = vsyncadd [#allocation3], 4294967264  ;;  %v24_v0 = vld [vmem:[#allocation2] sm:$0x3]  ;;  %v58_v21 = vlaneseq }
   0x5   :  { %v73_v1 = vmul.f32 -1.442695, %v24_v0 }
   0x6   :  { %vm60_vm4 = vcmp.lt.s32.totalorder %v58_v21, 256 }
   0x7   :  { %75 = vpow2.f32 %v73_v1 }
   0xd   :  { %v76_v2 = vpop.eup %75 }
   0xe   :  { %v28_v3 = vadd.f32 1.0, %v76_v2 }
  0x10   :  { %77 = vrcp.f32 %v28_v3  ;;  %v40_v6 = vand.u32 2147483648, %v28_v3  ;;  %vm34_vm0 = vweird.f32 %v28_v3  ;;  %v38_v8 = vand.u32 2147483647, %v28_v3 }
  0x12   :  { %v41_v10 = vor.u32 1.1754944e-38, %v40_v6  ;;  %vm39_vm3 = vcmp.eq.f32.partialorder %v38_v8, 8.507059e+37 }
  0x16   :  { %v78_v4 = vpop.eup %77 }
  0x17   :  { %v30_v5 = vmul.f32 %v78_v4, %v28_v3  ;;  %vm35_vm1 = vweird.f32 %v78_v4 }
  0x18   :  { %vm36_vm2 = vmor %vm34_vm0, %vm35_vm1 }
  0x19   :  { %v31_v7 = vsub.f32 1.0, %v30_v5 }
  0x1b   :  { %v32_v9 = vmul.f32 %v78_v4, %v31_v7 }
  0x1d   :  { %v33_v11 = vadd.f32 %v78_v4, %v32_v9 }
  0x1f   :  { %v37_v12 = vsel %vm36_vm2, %v78_v4, %v33_v11 }
  0x20   :  { %v42_v13 = vsel %vm39_vm3, %v41_v10, %v37_v12 }
  0x21   :  { %v44_v14 = vsub.f32 1.0, %v42_v13  ;;  %v48_v15 = vadd.f32 1e-08, %v42_v13 }
  0x23   :  { %v45_v16 = vadd.f32 1e-08, %v44_v14  ;;  %79 = vlog2.f32 %v48_v15  ;;  %v52_v18 = vmul.f32 %v48_v15, %v48_v15 }
  0x25   :  { %v46_v17 = vmul.f32 %v45_v16, %v45_v16  ;;  %81 = vlog2.f32 %v45_v16  ;;  %v53_v23 = vmul.f32 -0.75, %v52_v18 }
  0x27   :  { %v47_v19 = vmul.f32 -0.25, %v46_v17 }
  0x29   :  { %v80_v20 = vpop.eup %79 }
  0x2a   :  { %v50_v22 = vmul.f32 0.6931472, %v80_v20 }
  0x2b   :  { %v82_v24 = vpop.eup %81 }
  0x2c   :  { %v51_v25 = vmul.f32 %v50_v22, %v47_v19  ;;  %v55_v26 = vmul.f32 0.6931472, %v82_v24 }
  0x2e   :  { %v56_v27 = vmul.f32 %v55_v26, %v53_v23 }
  0x30   :  { %v57_v28 = vsub.f32 %v51_v25, %v56_v27  ;;  %63 = vst.msk [vmem:[%s136_s2] sm:$0x3] %vm60_vm4, %v56_v27 }
  0x32   :  { %62 = vst.msk [vmem:[%s135_s1] sm:$0x3] %vm60_vm4, %v57_v28 }
  0x33   :  { %72 = vsyncpa [#allocation3], 1 }

// kernel: binary_focal_loss_with_logits.3
= control target key start
LH: loop header
LB: loop body
LE: loop exit
PB: predicated region body
PF: predicated region fallthrough
CT: control target
= control target key end

     0   :  { %s637_s12 = smov 0   ;;  %s639_s13 = smov 0   ;;  %s804_s0 = inlined_call_operand.vmem [shape: f32[1,256], index: 0, kind: input, shape index: {}]   ;;  %s805_s1 = inlined_call_operand.vmem [shape: f32[1,256], index: 1, kind: input, shape index: {}]   ;;  %s806_s2 = inlined_call_operand.vmem [shape: f32[256,1], index: 2, kind: input, shape index: {}]   ;;  %s807_s3 = inlined_call_operand.vmem [shape: f32[256,256], index: 3, kind: output, shape index: {}]  }
   0x1   :  { %s641_s14 = smov 0  }
   0x2 LB: > { %s25_s15 = sadd.s32 1, %s610_s13  ;;  %p555_p0 = scmp.ge.s32.totalorder %s614_s14, 1  ;;  %s614_s14 = sphi %s641_s14, %s13_s14   ;;  %s610_s13 = sphi %s639_s13, %s809_s13   ;;  %s606_s12 = sphi %s637_s12, %s808_s12  }
   0x3   : > { %p27_p1 = scmp.ge.s32.totalorder %s25_s15, 2  ;;  %p172_p2 = scmp.lt.s32.totalorder %s614_s14, 3 }
   0x5   : > { %s811_s15 = smov (%p27_p1, %s25_s15), 0  ;;  %p173_p3 = pnand %p555_p0, %p172_p2 }
   0x6   : > { %s556_s16 = sshll.u32 (!%p173_p3), %s606_s12, 4 }
   0x7   : > { %176 = sbr.rel (%p173_p3) target bundleno = 178 (0xb2), region = 32  ;;  %p220_p4 = scmp.lt.s32.totalorder (!%p173_p3), %s556_s16, 31 }
   0xc   : > { %v616_v0 = vmov 0   ;;  %s813_s16 = smov (!%p220_p4, %s556_s16), 31  ;;  %v253_v17 = vld [vmem:[%s804_s0] sm:$0x3] }
   0xd   : > { %591 = vset.pattern.permute.xlu2 %v616_v0  ;;  %590 = vset.pattern.permute.xlu1 %v616_v0  ;;  %s557_s17 = sshll.u32 %s813_s16, 3  ;;  %v371_v18 = vld [vmem:[%s805_s1] sm:$0x3]  ;;  %v685_v19 = vperm.slane %v253_v17, 0  ;;  %v687_v20 = vperm.slane %v253_v17, 1  ;;  %s563_s25 = sshll.u32 %s813_s16, 4 }
   0xe   : > { %589 = vset.pattern.permute.xlu0 %v616_v0  ;;  %s661_s20 = scalar_lea.vmem %s806_s2, %s557_s17  ;;  %v690_v22 = vperm.slane %v371_v18, 0  ;;  %v692_v23 = vperm.slane %v371_v18, 1  ;;  %s701_s28 = scalar_lea.vmem %s807_s3, %s563_s25 }
   0xf   : > { %v241_v1 = vld [vmem:[%s661_s20 + $0x20] sm:$0xff]  ;;  %v239_v2 = vld [vmem:[%s661_s20 + $0x10] sm:$0xff]  ;;  %v242_v4 = vld [vmem:[%s661_s20 + $0x28] sm:$0xff] }
  0x10   : > { %v237_v3 = vld [vmem:[%s661_s20] sm:$0xff]  ;;  %276 = vperm.xlu2 %591, %v241_v1   ;;  %266 = vperm.xlu1 %590, %v239_v2   ;;  %v240_v5 = vld [vmem:[%s661_s20 + $0x18] sm:$0xff]  ;;  %v238_v6 = vld [vmem:[%s661_s20 + $0x8] sm:$0xff] }
  0x11   : > { %256 = vperm.xlu0 %589, %v237_v3   ;;  %v245_v7 = vld [vmem:[%s661_s20 + $0x40] sm:$0xff]  ;;  %v244_v8 = vld [vmem:[%s661_s20 + $0x38] sm:$0xff]  ;;  %v243_v9 = vld [vmem:[%s661_s20 + $0x30] sm:$0xff] }
  0x12   : > { %v248_v10 = vld [vmem:[%s661_s20 + $0x58] sm:$0xff]  ;;  %v247_v11 = vld [vmem:[%s661_s20 + $0x50] sm:$0xff]  ;;  %v246_v12 = vld [vmem:[%s661_s20 + $0x48] sm:$0xff] }
  0x13   : > { %v251_v13 = vld [vmem:[%s661_s20 + $0x70] sm:$0xff]  ;;  %v250_v14 = vld [vmem:[%s661_s20 + $0x68] sm:$0xff]  ;;  %v249_v15 = vld [vmem:[%s661_s20 + $0x60] sm:$0xff] }
  0x14   : > { %v252_v16 = vld [vmem:[%s661_s20 + $0x78] sm:$0xff] }
  0x18   : > { %281 = vperm.xlu2 %591, %v242_v4   ;;  %271 = vperm.xlu1 %590, %v240_v5  }
  0x19   : > { %261 = vperm.xlu0 %589, %v238_v6  }
  0x20   : > { %296 = vperm.xlu2 %591, %v245_v7   ;;  %291 = vperm.xlu1 %590, %v244_v8  }
  0x21   : > { %286 = vperm.xlu0 %589, %v243_v9  }
  0x28   : > { %311 = vperm.xlu2 %591, %v248_v10   ;;  %306 = vperm.xlu1 %590, %v247_v11  }
  0x29   : > { %301 = vperm.xlu0 %589, %v246_v12  }
  0x30   : > { %326 = vperm.xlu2 %591, %v251_v13   ;;  %321 = vperm.xlu1 %590, %v250_v14  }
  0x31   : > { %316 = vperm.xlu0 %589, %v249_v15  }
  0x39   : > { %331 = vperm.xlu0 %589, %v252_v16  }
  0x6a   : > { %v277_v21 = vpop.permute.xlu2 %276 }
  0x6b   : > { %v347_v24 = vmul.f32 %v685_v19, %v277_v21  ;;  %v348_v25 = vmul.f32 %v687_v20, %v277_v21 }
  0x6d   : > { %v385_v26 = vadd.f32 %v690_v22, %v347_v24  ;;  %v386_v27 = vadd.f32 %v692_v23, %v348_v25 }
  0x6f   : > { %417 = vst [vmem:[%s701_s28 + $0x40] sm:$0xff] %v385_v26 }
  0x70   : > { %418 = vst [vmem:[%s701_s28 + $0x48] sm:$0xff] %v386_v27 }
  0x72   : > { %v282_v28 = vpop.permute.xlu2 %281 }
  0x73   : > { %v349_v29 = vmul.f32 %v685_v19, %v282_v28  ;;  %v350_v30 = vmul.f32 %v687_v20, %v282_v28 }
  0x75   : > { %v387_v31 = vadd.f32 %v690_v22, %v349_v29  ;;  %v388_v32 = vadd.f32 %v692_v23, %v350_v30 }
  0x77   : > { %419 = vst [vmem:[%s701_s28 + $0x50] sm:$0xff] %v387_v31 }
  0x78   : > { %420 = vst [vmem:[%s701_s28 + $0x58] sm:$0xff] %v388_v32 }
  0x7a   : > { %v297_v33 = vpop.permute.xlu2 %296 }
  0x7b   : > { %v355_v34 = vmul.f32 %v685_v19, %v297_v33  ;;  %v356_v35 = vmul.f32 %v687_v20, %v297_v33 }
  0x7d   : > { %v393_v36 = vadd.f32 %v690_v22, %v355_v34  ;;  %v394_v37 = vadd.f32 %v692_v23, %v356_v35 }
  0x7f   : > { %425 = vst [vmem:[%s701_s28 + $0x80] sm:$0xff] %v393_v36 }
  0x80   : > { %426 = vst [vmem:[%s701_s28 + $0x88] sm:$0xff] %v394_v37 }
  0x82   : > { %v312_v38 = vpop.permute.xlu2 %311  ;;  %v267_v39 = vpop.permute.xlu1 %266 }
  0x83   : > { %v361_v40 = vmul.f32 %v685_v19, %v312_v38  ;;  %v362_v41 = vmul.f32 %v687_v20, %v312_v38  ;;  %v343_v42 = vmul.f32 %v685_v19, %v267_v39  ;;  %v344_v43 = vmul.f32 %v687_v20, %v267_v39  ;;  %v257_v44 = vpop.permute.xlu0 %256 }
  0x84   : > { %v339_v45 = vmul.f32 %v685_v19, %v257_v44  ;;  %v340_v46 = vmul.f32 %v687_v20, %v257_v44 }
  0x85   : > { %v399_v47 = vadd.f32 %v690_v22, %v361_v40  ;;  %v400_v48 = vadd.f32 %v692_v23, %v362_v41  ;;  %v381_v49 = vadd.f32 %v690_v22, %v343_v42  ;;  %v382_v50 = vadd.f32 %v692_v23, %v344_v43 }
  0x86   : > { %v377_v51 = vadd.f32 %v690_v22, %v339_v45  ;;  %v378_v52 = vadd.f32 %v692_v23, %v340_v46 }
  0x87   : > { %431 = vst [vmem:[%s701_s28 + $0xb0] sm:$0xff] %v399_v47 }
  0x88   : > { %432 = vst [vmem:[%s701_s28 + $0xb8] sm:$0xff] %v400_v48 }
  0x89   : > { %413 = vst [vmem:[%s701_s28 + $0x20] sm:$0xff] %v381_v49 }
  0x8a   : > { %414 = vst [vmem:[%s701_s28 + $0x28] sm:$0xff] %v382_v50  ;;  %v327_v53 = vpop.permute.xlu2 %326  ;;  %v272_v54 = vpop.permute.xlu1 %271 }
  0x8b   : > { %409 = vst [vmem:[%s701_s28] sm:$0xff] %v377_v51  ;;  %v367_v55 = vmul.f32 %v685_v19, %v327_v53  ;;  %v368_v56 = vmul.f32 %v687_v20, %v327_v53  ;;  %v345_v57 = vmul.f32 %v685_v19, %v272_v54  ;;  %v346_v58 = vmul.f32 %v687_v20, %v272_v54  ;;  %v262_v59 = vpop.permute.xlu0 %261 }
  0x8c   : > { %410 = vst [vmem:[%s701_s28 + $0x8] sm:$0xff] %v378_v52  ;;  %v341_v60 = vmul.f32 %v685_v19, %v262_v59  ;;  %v342_v61 = vmul.f32 %v687_v20, %v262_v59 }
  0x8d   : > { %v405_v62 = vadd.f32 %v690_v22, %v367_v55  ;;  %v406_v63 = vadd.f32 %v692_v23, %v368_v56  ;;  %v383_v0 = vadd.f32 %v690_v22, %v345_v57  ;;  %v384_v1 = vadd.f32 %v692_v23, %v346_v58 }
  0x8e   : > { %v379_v2 = vadd.f32 %v690_v22, %v341_v60  ;;  %v380_v3 = vadd.f32 %v692_v23, %v342_v61 }
  0x8f   : > { %437 = vst [vmem:[%s701_s28 + $0xe0] sm:$0xff] %v405_v62 }
  0x90   : > { %438 = vst [vmem:[%s701_s28 + $0xe8] sm:$0xff] %v406_v63 }
  0x91   : > { %415 = vst [vmem:[%s701_s28 + $0x30] sm:$0xff] %v383_v0 }
  0x92   : > { %416 = vst [vmem:[%s701_s28 + $0x38] sm:$0xff] %v384_v1  ;;  %v292_v4 = vpop.permute.xlu1 %291 }
  0x93   : > { %411 = vst [vmem:[%s701_s28 + $0x10] sm:$0xff] %v379_v2  ;;  %v353_v5 = vmul.f32 %v685_v19, %v292_v4  ;;  %v354_v6 = vmul.f32 %v687_v20, %v292_v4  ;;  %v287_v7 = vpop.permute.xlu0 %286 }
  0x94   : > { %412 = vst [vmem:[%s701_s28 + $0x18] sm:$0xff] %v380_v3  ;;  %v351_v8 = vmul.f32 %v685_v19, %v287_v7  ;;  %v352_v9 = vmul.f32 %v687_v20, %v287_v7 }
  0x95   : > { %v391_v10 = vadd.f32 %v690_v22, %v353_v5  ;;  %v392_v11 = vadd.f32 %v692_v23, %v354_v6 }
  0x96   : > { %v389_v12 = vadd.f32 %v690_v22, %v351_v8  ;;  %v390_v13 = vadd.f32 %v692_v23, %v352_v9 }
  0x97   : > { %423 = vst [vmem:[%s701_s28 + $0x70] sm:$0xff] %v391_v10 }
  0x98   : > { %424 = vst [vmem:[%s701_s28 + $0x78] sm:$0xff] %v392_v11 }
  0x99   : > { %421 = vst [vmem:[%s701_s28 + $0x60] sm:$0xff] %v389_v12 }
  0x9a   : > { %422 = vst [vmem:[%s701_s28 + $0x68] sm:$0xff] %v390_v13  ;;  %v307_v14 = vpop.permute.xlu1 %306 }
  0x9b   : > { %v359_v15 = vmul.f32 %v685_v19, %v307_v14  ;;  %v360_v16 = vmul.f32 %v687_v20, %v307_v14  ;;  %v302_v17 = vpop.permute.xlu0 %301 }
  0x9c   : > { %v357_v18 = vmul.f32 %v685_v19, %v302_v17  ;;  %v358_v21 = vmul.f32 %v687_v20, %v302_v17 }
  0x9d   : > { %v397_v24 = vadd.f32 %v690_v22, %v359_v15  ;;  %v398_v25 = vadd.f32 %v692_v23, %v360_v16 }
  0x9e   : > { %v395_v26 = vadd.f32 %v690_v22, %v357_v18  ;;  %v396_v27 = vadd.f32 %v692_v23, %v358_v21 }
  0x9f   : > { %429 = vst [vmem:[%s701_s28 + $0xa0] sm:$0xff] %v397_v24 }
  0xa0   : > { %430 = vst [vmem:[%s701_s28 + $0xa8] sm:$0xff] %v398_v25 }
  0xa1   : > { %427 = vst [vmem:[%s701_s28 + $0x90] sm:$0xff] %v395_v26 }
  0xa2   : > { %428 = vst [vmem:[%s701_s28 + $0x98] sm:$0xff] %v396_v27  ;;  %v322_v28 = vpop.permute.xlu1 %321 }
  0xa3   : > { %v365_v29 = vmul.f32 %v685_v19, %v322_v28  ;;  %v366_v30 = vmul.f32 %v687_v20, %v322_v28  ;;  %v317_v31 = vpop.permute.xlu0 %316 }
  0xa4   : > { %v363_v32 = vmul.f32 %v685_v19, %v317_v31  ;;  %v364_v33 = vmul.f32 %v687_v20, %v317_v31 }
  0xa5   : > { %v403_v34 = vadd.f32 %v690_v22, %v365_v29  ;;  %v404_v35 = vadd.f32 %v692_v23, %v366_v30 }
  0xa6   : > { %v401_v36 = vadd.f32 %v690_v22, %v363_v32  ;;  %v402_v37 = vadd.f32 %v692_v23, %v364_v33 }
  0xa7   : > { %435 = vst [vmem:[%s701_s28 + $0xd0] sm:$0xff] %v403_v34 }
  0xa8   : > { %436 = vst [vmem:[%s701_s28 + $0xd8] sm:$0xff] %v404_v35 }
  0xa9   : > { %433 = vst [vmem:[%s701_s28 + $0xc0] sm:$0xff] %v401_v36 }
  0xaa   : > { %434 = vst [vmem:[%s701_s28 + $0xc8] sm:$0xff] %v402_v37 }
  0xab   : > { %v332_v38 = vpop.permute.xlu0 %331 }
  0xac   : > { %v369_v39 = vmul.f32 %v685_v19, %v332_v38  ;;  %v370_v40 = vmul.f32 %v687_v20, %v332_v38 }
  0xae   : > { %v407_v41 = vadd.f32 %v690_v22, %v369_v39  ;;  %v408_v42 = vadd.f32 %v692_v23, %v370_v40 }
  0xb0   : > { %439 = vst [vmem:[%s701_s28 + $0xf0] sm:$0xff] %v407_v41 }
  0xb1   : > { %440 = vst [vmem:[%s701_s28 + $0xf8] sm:$0xff] %v408_v42 }
  0xb2 PF: > { %s13_s14 = sadd.s32 1, %s614_s14   ;;  %s808_s12 = smov %s610_s13 }
  0xb3   : > { %p10_p5 = scmp.ge.s32.totalorder %s13_s14, 4   ;;  %s809_s13 = smov %s811_s15 }
  0xb5   :  { %12 = sbr.rel (!%p10_p5) target bundleno = 2 (0x2), region = 68 }

</bundles_post_ra>
